<compile_context>
chip_gen: v7x
topology: tpu7x:2x2x1
jax: 0.10.0
libtpu: 0.0.40
codegen_flags: <defaults>
</compile_context>

<pallas_src>
import jax
import jax.numpy as jnp
from jax import lax
from jax.experimental import pallas as pl
from jax.experimental.pallas import tpu as pltpu

DIMS = [13, 96, 96, 96, 96, 96, 2]
N_LAYERS = len(DIMS) - 1
NUM_CLASSES = DIMS[-1]

PAD = 128            # lane-padded hidden width (96 -> 128)
IN_PAD = 16          # lane-padded input width (13 features + const-1 lane + 2 zero)
OUT_PAD = 8          # lane-padded output width (2 classes + 6 zero)
CONST_IN = DIMS[0]   # input lane holding the constant 1 (= 13)
CONST_HID = DIMS[1]  # hidden lane carrying the constant 1 (= 96)
SUB_ROWS = 256       # rows per in-kernel sub-tile (bounds vreg live ranges)


def _round_up(x, m):
    return (x + m - 1) // m * m


def _choose_tile(batch, tile_b):
    """Batch-tile rows: multiple of 8; for large B a multiple of SUB_ROWS capped so
    the grid keeps >= 2 tiles (v7x megacore sharding)."""
    if batch <= SUB_ROWS:
        return _round_up(batch, 8)
    n_blocks = pl.cdiv(batch, SUB_ROWS)
    blocks_per_tile = max(1, min(tile_b // SUB_ROWS, pl.cdiv(n_blocks, 2)))
    return blocks_per_tile * SUB_ROWS


def _mlp_kernel(x_ref, w_ref, o_ref):
    """Fused 6-layer MLP forward for one batch tile.

    x_ref: (TB, 16)  f32   features in lanes 0:13, constant 1 in lane 13
    w_ref: (6, 128, 128) bf16 packed augmented-affine weights (resident)
    o_ref: (TB, 8)   f32   lanes 0:2 hold log-probs
    """
    tb = x_ref.shape[0]
    sub = min(SUB_ROWS, tb)
    n_sub = tb // sub

    lane = lax.broadcasted_iota(jnp.int32, (sub, PAD), 1)
    cls_mask = lane < NUM_CLASSES

    def compute(r0):
        # Layer 0: only the 16 real weight rows (13 feats + bias row) are used.
        h = x_ref[pl.ds(r0, sub), :].astype(jnp.bfloat16)            # (sub, 16)
        y = jnp.dot(h, w_ref[0, :IN_PAD, :],
                    preferred_element_type=jnp.float32)              # (sub, 128) f32
        h = jnp.maximum(y, 0.0).astype(jnp.bfloat16)                 # bf16 hidden state

        # Hidden layers 1..4 (ReLU); bias + constant-1 carry live in weight row 96.
        for i in range(1, N_LAYERS - 1):
            y = jnp.dot(h, w_ref[i], preferred_element_type=jnp.float32)
            h = jnp.maximum(y, 0.0).astype(jnp.bfloat16)

        # Output layer (no ReLU). Lanes >= 2 of y are exactly 0 (zero weight cols).
        y = jnp.dot(h, w_ref[N_LAYERS - 1], preferred_element_type=jnp.float32)

        # 2-class log_softmax, elementwise (no full-width reductions):
        # roll(+1) + roll(-1) gives the partner logit at lanes 0 and 1 because the
        # neighbouring padded lanes are exactly zero (convention-independent).
        other = (pltpu.roll(y, shift=1, axis=1) +
                 pltpu.roll(y, shift=PAD - 1, axis=1))
        m = jnp.maximum(y, other)
        lse = m + jnp.log(jnp.exp(y - m) + jnp.exp(other - m))
        logp = jnp.where(cls_mask, y - lse, 0.0)
        o_ref[pl.ds(r0, sub), :] = logp[:, :OUT_PAD]

    if n_sub == 1:
        compute(0)
    else:
        def body(s, carry):
            compute(pl.multiple_of(s * sub, sub))
            return carry
        lax.fori_loop(0, n_sub, body, 0)


def pack_params(params):
    """Fold each layer's bias into a zero-padded, augmented-affine bf16 weight stack."""
    w_packed = jnp.zeros((N_LAYERS, PAD, PAD), jnp.float32)
    for i, (w, b) in enumerate(params):
        fi, fo = w.shape
        bias_row = CONST_IN if i == 0 else CONST_HID
        w_packed = w_packed.at[i, :fi, :fo].set(w)
        w_packed = w_packed.at[i, bias_row, :fo].set(b.reshape(-1))
        if i < N_LAYERS - 1:
            # Propagate the constant-1 lane into the next layer's activations.
            w_packed = w_packed.at[i, bias_row, CONST_HID].set(1.0)
    return w_packed.astype(jnp.bfloat16)


def mlp_forward(x, w_packed, *, tile_b=1024):
    """x: [B, 13] f32. Returns [B, 2] f32 log-probabilities."""
    B, F = x.shape
    assert F == DIMS[0]
    tb = _choose_tile(B, tile_b)
    b_pad = _round_up(B, tb)

    # Narrow 16-lane input slab: 13 features + constant-1 lane (carries the biases).
    x_pad = (jnp.zeros((b_pad, IN_PAD), jnp.float32)
             .at[:B, :F].set(x)
             .at[:B, CONST_IN].set(1.0))

    grid = (b_pad // tb,)
    out = pl.pallas_call(
        _mlp_kernel,
        out_shape=jax.ShapeDtypeStruct((b_pad, OUT_PAD), jnp.float32),
        grid=grid,
        in_specs=[
            pl.BlockSpec((tb, IN_PAD), lambda i: (i, 0)),              # x: per-tile
            pl.BlockSpec((N_LAYERS, PAD, PAD), lambda i: (0, 0, 0)),   # weights: resident
        ],
        out_specs=pl.BlockSpec((tb, OUT_PAD), lambda i: (i, 0)),       # narrow f32 output
        compiler_params=pltpu.CompilerParams(
            dimension_semantics=("parallel",),   # shards batch tiles across TCs (v7x)
        ),
    )(x_pad, w_packed)
    return out[:B, :NUM_CLASSES]


def init_params(key):
    """PyTorch nn.Linear default init: U(-1/sqrt(fan_in), +1/sqrt(fan_in))."""
    params = []
    for i in range(N_LAYERS):
        fan_in, fan_out = DIMS[i], DIMS[i + 1]
        key, kw, kb = jax.random.split(key, 3)
        bound = 1.0 / (fan_in ** 0.5)
        w = jax.random.uniform(kw, (fan_in, fan_out), jnp.float32, -bound, bound)
        b = jax.random.uniform(kb, (1, fan_out), jnp.float32, -bound, bound)
        params.append((w, b))
    return params


def reference_forward_f32(x, params):
    """Pure-f32 reference with the exact PyTorch forward semantics."""
    h = x
    for i, (w, b) in enumerate(params):
        y = h @ w + b
        h = jnp.maximum(y, 0.0) if i < len(params) - 1 else y
    return jax.nn.log_softmax(h, axis=-1)


def reference_forward_bf16(x, w_packed):
    """Mirrors the kernel's arithmetic (augmented affine, bf16 MXU inputs, f32 accum)."""
    B = x.shape[0]
    h = (jnp.zeros((B, IN_PAD), jnp.float32)
         .at[:, :DIMS[0]].set(x)
         .at[:, CONST_IN].set(1.0)).astype(jnp.bfloat16)
    y = jnp.dot(h, w_packed[0, :IN_PAD, :], preferred_element_type=jnp.float32)
    h = jnp.maximum(y, 0.0).astype(jnp.bfloat16)
    for i in range(1, N_LAYERS - 1):
        y = jnp.dot(h, w_packed[i], preferred_element_type=jnp.float32)
        h = jnp.maximum(y, 0.0).astype(jnp.bfloat16)
    y = jnp.dot(h, w_packed[N_LAYERS - 1], preferred_element_type=jnp.float32)
    return jax.nn.log_softmax(y[:, :NUM_CLASSES], axis=-1)


if __name__ == "__main__":
    key = jax.random.PRNGKey(0)
    key, kx, kx2 = jax.random.split(key, 3)
    params = init_params(key)
    w_packed = pack_params(params)

    # Small demo batch (single tile, single in-kernel sub-tile).
    batch = 8
    x = jax.random.normal(kx, (batch, DIMS[0]), jnp.float32)   # 13 wine features
    out = jax.block_until_ready(mlp_forward(x, w_packed))
    assert out.shape == (batch, NUM_CLASSES)
    assert bool(jnp.all(jnp.isfinite(out)))
    assert jnp.allclose(jnp.sum(jnp.exp(out), axis=-1), 1.0, atol=1e-3)
    assert jnp.allclose(out, reference_forward_bf16(x, w_packed),
                        atol=2e-2, rtol=2e-2), "mismatch vs bf16 reference (small batch)"
    assert jnp.allclose(out, reference_forward_f32(x, params),
                        atol=2e-1), "mismatch vs f32 reference (small batch)"

    # Larger batch: exercises the multi-tile grid and the in-kernel sub-tile loop.
    batch2 = 600
    x2 = jax.random.normal(kx2, (batch2, DIMS[0]), jnp.float32)
    out2 = jax.block_until_ready(mlp_forward(x2, w_packed))
    assert out2.shape == (batch2, NUM_CLASSES)
    assert jnp.allclose(out2, reference_forward_bf16(x2, w_packed),
                        atol=2e-2, rtol=2e-2), "mismatch vs bf16 reference (large batch)"
    assert jnp.allclose(out2, reference_forward_f32(x2, params),
                        atol=2e-1), "mismatch vs f32 reference (large batch)"

    print("KERNEL_OK")
</pallas_src>

<mosaic_0001>
module attributes {stable_mosaic.version = 11 : i64} {
  func.func @_mlp_kernel(%arg0: i32, %arg1: memref<8x16xf32, #tpu.memory_space<vmem>>, %arg2: memref<6x128x128xbf16, #tpu.memory_space<vmem>>, %arg3: memref<8x8xf32, #tpu.memory_space<vmem>>) attributes {dimension_semantics = [#tpu.dimension_semantics<parallel>], iteration_bounds = array<i64: 1>, scalar_prefetch = 0 : i64, scratch_operands = 0 : i64, tpu.core_type = #tpu.core_type<tc>, window_params = [{transform_indices = @transform_0, window_bounds = array<i64: 8, 16>}, {pipeline_mode = #tpu.pipeline_mode<synchronous>, transform_indices = @transform_1, window_bounds = array<i64: 6, 128, 128>}, {transform_indices = @transform_2, window_bounds = array<i64: 8, 8>}]} {
    %0 = tpu.iota {dimensions = array<i32: 1>} : vector<8x128xi32>
    %c2_i32 = arith.constant 2 : i32
    %1 = vector.broadcast %c2_i32 : i32 to vector<8x128xi32>
    %2 = arith.cmpi slt, %0, %1 : vector<8x128xi32>
    %c0 = arith.constant 0 : index
    %c0_0 = arith.constant 0 : index
    %3 = vector.load %arg1[%c0, %c0_0] : memref<8x16xf32, #tpu.memory_space<vmem>>, vector<8x16xf32>
    %4 = arith.truncf %3 : vector<8x16xf32> to vector<8x16xbf16>
    %c0_1 = arith.constant 0 : index
    %c0_2 = arith.constant 0 : index
    %c0_3 = arith.constant 0 : index
    %5 = vector.load %arg2[%c0_1, %c0_2, %c0_3] : memref<6x128x128xbf16, #tpu.memory_space<vmem>>, vector<1x16x128xbf16>
    %6 = vector.shape_cast %5 : vector<1x16x128xbf16> to vector<16x128xbf16>
    %cst = arith.constant dense<0.000000e+00> : vector<8x128xf32>
    %7 = tpu.matmul %4, %6, %cst {dimension_numbers = #tpu.dot_dimension_numbers<[1], [0], [0], [1], [0, 0, 1, 1], [], []>} : vector<8x16xbf16>, vector<16x128xbf16>, vector<8x128xf32> -> vector<8x128xf32>
    %cst_4 = arith.constant 0.000000e+00 : f32
    %8 = vector.broadcast %cst_4 : f32 to vector<8x128xf32>
    %9 = arith.maximumf %7, %8 : vector<8x128xf32>
    %10 = arith.truncf %9 : vector<8x128xf32> to vector<8x128xbf16>
    %c1 = arith.constant 1 : index
    %c0_5 = arith.constant 0 : index
    %c0_6 = arith.constant 0 : index
    %11 = vector.load %arg2[%c1, %c0_5, %c0_6] : memref<6x128x128xbf16, #tpu.memory_space<vmem>>, vector<1x128x128xbf16>
    %12 = vector.shape_cast %11 : vector<1x128x128xbf16> to vector<128x128xbf16>
    %cst_7 = arith.constant dense<0.000000e+00> : vector<8x128xf32>
    %13 = tpu.matmul %10, %12, %cst_7 {dimension_numbers = #tpu.dot_dimension_numbers<[1], [0], [0], [1], [0, 0, 1, 1], [], []>} : vector<8x128xbf16>, vector<128x128xbf16>, vector<8x128xf32> -> vector<8x128xf32>
    %cst_8 = arith.constant 0.000000e+00 : f32
    %14 = vector.broadcast %cst_8 : f32 to vector<8x128xf32>
    %15 = arith.maximumf %13, %14 : vector<8x128xf32>
    %16 = arith.truncf %15 : vector<8x128xf32> to vector<8x128xbf16>
    %c2 = arith.constant 2 : index
    %c0_9 = arith.constant 0 : index
    %c0_10 = arith.constant 0 : index
    %17 = vector.load %arg2[%c2, %c0_9, %c0_10] : memref<6x128x128xbf16, #tpu.memory_space<vmem>>, vector<1x128x128xbf16>
    %18 = vector.shape_cast %17 : vector<1x128x128xbf16> to vector<128x128xbf16>
    %cst_11 = arith.constant dense<0.000000e+00> : vector<8x128xf32>
    %19 = tpu.matmul %16, %18, %cst_11 {dimension_numbers = #tpu.dot_dimension_numbers<[1], [0], [0], [1], [0, 0, 1, 1], [], []>} : vector<8x128xbf16>, vector<128x128xbf16>, vector<8x128xf32> -> vector<8x128xf32>
    %cst_12 = arith.constant 0.000000e+00 : f32
    %20 = vector.broadcast %cst_12 : f32 to vector<8x128xf32>
    %21 = arith.maximumf %19, %20 : vector<8x128xf32>
    %22 = arith.truncf %21 : vector<8x128xf32> to vector<8x128xbf16>
    %c3 = arith.constant 3 : index
    %c0_13 = arith.constant 0 : index
    %c0_14 = arith.constant 0 : index
    %23 = vector.load %arg2[%c3, %c0_13, %c0_14] : memref<6x128x128xbf16, #tpu.memory_space<vmem>>, vector<1x128x128xbf16>
    %24 = vector.shape_cast %23 : vector<1x128x128xbf16> to vector<128x128xbf16>
    %cst_15 = arith.constant dense<0.000000e+00> : vector<8x128xf32>
    %25 = tpu.matmul %22, %24, %cst_15 {dimension_numbers = #tpu.dot_dimension_numbers<[1], [0], [0], [1], [0, 0, 1, 1], [], []>} : vector<8x128xbf16>, vector<128x128xbf16>, vector<8x128xf32> -> vector<8x128xf32>
    %cst_16 = arith.constant 0.000000e+00 : f32
    %26 = vector.broadcast %cst_16 : f32 to vector<8x128xf32>
    %27 = arith.maximumf %25, %26 : vector<8x128xf32>
    %28 = arith.truncf %27 : vector<8x128xf32> to vector<8x128xbf16>
    %c4 = arith.constant 4 : index
    %c0_17 = arith.constant 0 : index
    %c0_18 = arith.constant 0 : index
    %29 = vector.load %arg2[%c4, %c0_17, %c0_18] : memref<6x128x128xbf16, #tpu.memory_space<vmem>>, vector<1x128x128xbf16>
    %30 = vector.shape_cast %29 : vector<1x128x128xbf16> to vector<128x128xbf16>
    %cst_19 = arith.constant dense<0.000000e+00> : vector<8x128xf32>
    %31 = tpu.matmul %28, %30, %cst_19 {dimension_numbers = #tpu.dot_dimension_numbers<[1], [0], [0], [1], [0, 0, 1, 1], [], []>} : vector<8x128xbf16>, vector<128x128xbf16>, vector<8x128xf32> -> vector<8x128xf32>
    %cst_20 = arith.constant 0.000000e+00 : f32
    %32 = vector.broadcast %cst_20 : f32 to vector<8x128xf32>
    %33 = arith.maximumf %31, %32 : vector<8x128xf32>
    %34 = arith.truncf %33 : vector<8x128xf32> to vector<8x128xbf16>
    %c5 = arith.constant 5 : index
    %c0_21 = arith.constant 0 : index
    %c0_22 = arith.constant 0 : index
    %35 = vector.load %arg2[%c5, %c0_21, %c0_22] : memref<6x128x128xbf16, #tpu.memory_space<vmem>>, vector<1x128x128xbf16>
    %36 = vector.shape_cast %35 : vector<1x128x128xbf16> to vector<128x128xbf16>
    %cst_23 = arith.constant dense<0.000000e+00> : vector<8x128xf32>
    %37 = tpu.matmul %34, %36, %cst_23 {dimension_numbers = #tpu.dot_dimension_numbers<[1], [0], [0], [1], [0, 0, 1, 1], [], []>} : vector<8x128xbf16>, vector<128x128xbf16>, vector<8x128xf32> -> vector<8x128xf32>
    %c1_i32 = arith.constant 1 : i32
    %38 = tpu.dynamic_rotate %37 by %c1_i32 dim 1 : vector<8x128xf32>, i32 -> vector<8x128xf32>
    %c127_i32 = arith.constant 127 : i32
    %39 = tpu.dynamic_rotate %37 by %c127_i32 dim 1 : vector<8x128xf32>, i32 -> vector<8x128xf32>
    %40 = arith.addf %38, %39 : vector<8x128xf32>
    %41 = arith.maximumf %37, %40 : vector<8x128xf32>
    %42 = arith.subf %37, %41 : vector<8x128xf32>
    %43 = math.exp %42 : vector<8x128xf32>
    %44 = arith.subf %40, %41 : vector<8x128xf32>
    %45 = math.exp %44 : vector<8x128xf32>
    %46 = arith.addf %43, %45 : vector<8x128xf32>
    %47 = math.log %46 : vector<8x128xf32>
    %48 = arith.addf %41, %47 : vector<8x128xf32>
    %49 = arith.subf %37, %48 : vector<8x128xf32>
    %cst_24 = arith.constant 0.000000e+00 : f32
    %50 = vector.broadcast %cst_24 : f32 to vector<8x128xf32>
    %51 = arith.select %2, %49, %50 : vector<8x128xi1>, vector<8x128xf32>
    %52 = vector.extract_strided_slice %51 {offsets = [0, 0], sizes = [8, 8], strides = [1, 1]} : vector<8x128xf32> to vector<8x8xf32>
    %c0_25 = arith.constant 0 : index
    %c0_26 = arith.constant 0 : index
    %53 = vector.load %arg3[%c0_25, %c0_26] : memref<8x8xf32, #tpu.memory_space<vmem>>, vector<8x8xf32>
    tpu.vector_store %arg3[%c0_25, %c0_26], %52 {strides = array<i32>} : memref<8x8xf32, #tpu.memory_space<vmem>>, vector<8x8xf32>,
    return
  }
  func.func @transform_0(%arg0: i32) -> (i32, i32) {
    %c0_i32 = arith.constant 0 : i32
    %c0_i32_0 = arith.constant 0 : i32
    return %arg0, %c0_i32 : i32, i32
  }
  func.func @transform_1(%arg0: i32) -> (i32, i32, i32) {
    %c0_i32 = arith.constant 0 : i32
    %c0_i32_0 = arith.constant 0 : i32
    %c0_i32_1 = arith.constant 0 : i32
    %c0_i32_2 = arith.constant 0 : i32
    return %c0_i32, %c0_i32_0, %c0_i32_1 : i32, i32, i32
  }
  func.func @transform_2(%arg0: i32) -> (i32, i32) {
    %c0_i32 = arith.constant 0 : i32
    %c0_i32_0 = arith.constant 0 : i32
    return %arg0, %c0_i32 : i32, i32
  }
}

</mosaic_0001>

<bundles_post_ra>
// kernel: tpu_custom_call.1
= control target key start
LH: loop header
LB: loop body
LE: loop exit
PB: predicated region body
PF: predicated region fallthrough
CT: control target
= control target key end

     0   :  { %7 = vsyncpa [#allocation3], 0  ;;  %s1110_s0 = inlined_call_operand.hbm [shape: f32[8,16], index: 0, kind: input, shape index: {}]   ;;  %s1111_s1 = inlined_call_operand.hbm [shape: bf16[6,128,128], index: 1, kind: input, shape index: {}]   ;;  %s1112_s2 = inlined_call_operand.hbm [shape: f32[8,8], index: 2, kind: output, shape index: {}]  }
   0x1   :  { %8 = vsyncpa [#allocation6], 0 }
   0x2   :  { %9 = vsyncpa [#allocation4], 0  ;;  %s990_s9 = smov [#allocation2]   ;;  %s991_s11 = smov [#allocation5]  }
   0x3   :  { %s16_s10 = sshll.u32 %s990_s9, 4  ;;  %s25_s12 = sshll.u32 %s991_s11, 4  ;;  %s17_s10 = int_to_ptr.vmem [resolvable:$true] %s16_s10  ;;  %s1014_s12 = int_to_ptr.vmem [resolvable:$true] %s25_s12 }
   0x4   :  { %s918_s15 = scalar_lea.hbm %s1110_s0, 128 }
   0x5   :  { %p919_p0 = scmp.ne.s32.totalorder %s1110_s0, %s918_s15  ;;  %p922_p1 = scmp.lt.u32.totalorder %s918_s15, %s1110_s0 }
   0x7   :  { %p924_p2 = pnand %p922_p1, %p919_p0 }
   0x9   :  { %927 = shalt.err (!%p924_p2)
}
   0xa   :  { %s928_s20 = scalar_lea.vmem %s17_s10, 128  ;;  %p933_p4 = scmp.lt.s32.totalorder %s17_s10, %s17_s10 }
   0xb   :  { %p929_p3 = scmp.ne.s32.totalorder %s17_s10, %s928_s20  ;;  %p934_p5 = scmp.lt.s32.totalorder %s928_s20, %s928_s20 }
   0xd   :  { %p935_p6 = por %p934_p5, %p933_p4 }
   0xf   :  { %p936_p7 = pnand %p935_p6, %p929_p3 }
  0x11   :  { %939 = shalt.err (!%p936_p7)
}
  0x12   :  { %19 = dma.hbm_to_vmem [thread:$0]  %s1110_s0, 128, %s17_s10, [#allocation3]  }
  0x13   :  { %s940_s25 = scalar_lea.hbm %s1111_s1, 6144 }
  0x14   :  { %p941_p8 = scmp.ne.s32.totalorder %s1111_s1, %s940_s25  ;;  %p944_p9 = scmp.lt.u32.totalorder %s940_s25, %s1111_s1 }
  0x16   :  { %p946_p10 = pnand %p944_p9, %p941_p8 }
  0x18   :  { %949 = shalt.err (!%p946_p10)
}
  0x19   :  { %s950_s30 = scalar_lea.vmem %s1014_s12, 6144  ;;  %p955_p12 = scmp.lt.s32.totalorder %s1014_s12, %s1014_s12 }
  0x1a   :  { %p951_p11 = scmp.ne.s32.totalorder %s1014_s12, %s950_s30  ;;  %p956_p13 = scmp.lt.s32.totalorder %s950_s30, %s950_s30 }
  0x1c   :  { %p957_p0 = por %p956_p13, %p955_p12 }
  0x1e   :  { %p958_p1 = pnand %p957_p0, %p951_p11 }
  0x20   :  { %961 = shalt.err (!%p958_p1)
}
  0x21   :  { %s992_s0 = smov 64   ;;  %s993_s3 = smov 4  }
  0x22   :  { %31 = dma.hbm_to_vmem [thread:$0]  %s1111_s1, 6144, %s1014_s12, [#allocation6], %s992_s0, %s992_s0, %s993_s3  }
  0x23   :  { %984 = dma.done.wait [#allocation3], 128  }
  0x24   :  { %985 = vsyncadd [#allocation3], 4294967168 }
  0x25   :  { %986 = dma.done.wait [#allocation6], 6144  }
  0x26   :  { %987 = vsyncadd [#allocation6], 4294961152  ;;  %v994_v0 = vmov 0.0   ;;  %vm995_vm0 = vmmov 0   ;;  %v871_v1 = vld [vmem:[#allocation5] sm:$0xff]   ;;  %v42_v2 = vld [vmem:[#allocation2] sm:$0xff] }
  0x27   :  { %756 = vmatprep.subr.bf16.mxu0 %v994_v0  ;;  %758 = vmatprep.mubr.msk.bf16.mxu0 %vm995_vm0, %v994_v0  ;;  %v43_v3 = vpack.c.bf16 %v42_v2, %v42_v2  ;;  %vm52_vm1 = vcmask 130048   ;;  %v872_v4 = vld [vmem:[#allocation5 + $0x40] sm:$0xff]   ;;  %v873_v5 = vld [vmem:[#allocation5 + $0x48] sm:$0xff]   ;;  %v874_v6 = vld [vmem:[#allocation5 + $0x50] sm:$0xff]   ;;  %s996_s1 = smov 1   ;;  %s997_s6 = smov 127  }
  0x28   :  { %762 = vmatprep.subr.bf16.mxu1 %v994_v0  ;;  %778 = vmatprep.mubr.msk.bf16.mxu1 %vm995_vm0, %v994_v0  ;;  %v875_v7 = vld [vmem:[#allocation5 + $0x58] sm:$0xff]   ;;  %v876_v8 = vld [vmem:[#allocation5 + $0x60] sm:$0xff]   ;;  %v877_v9 = vld [vmem:[#allocation5 + $0x68] sm:$0xff]   ;;  %s998_s7 = smov [#allocation7]   ;;  %vm649_vm3 = vcmask 64512  }
  0x29   :  { %757 = vmatpush3.bf16.msra.mxu0 %v871_v1  ;;  %763 = vmatpush3.bf16.msra.mxu1 %v872_v4  ;;  %v878_v10 = vld [vmem:[#allocation5 + $0x70] sm:$0xff]   ;;  %v879_v11 = vld [vmem:[#allocation5 + $0x78] sm:$0xff]   ;;  %v880_v12 = vld [vmem:[#allocation5 + $0x80] sm:$0xff]   ;;  %s657_s8 = sshll.u32 %s998_s7, 4  ;;  %s658_s8 = int_to_ptr.vmem [resolvable:$true] %s657_s8 }
  0x2a   :  { %782 = vmatprep.subr.bf16.mxu0 %v994_v0  ;;  %764 = vmatprep.subr.bf16.mxu1 %v994_v0  ;;  %v881_v13 = vld [vmem:[#allocation5 + $0x88] sm:$0xff]   ;;  %v882_v14 = vld [vmem:[#allocation5 + $0x90] sm:$0xff]   ;;  %v883_v15 = vld [vmem:[#allocation5 + $0x98] sm:$0xff]   ;;  %s962_s9 = scalar_lea.vmem %s658_s8, 128  ;;  %p967_p3 = scmp.lt.s32.totalorder %s658_s8, %s658_s8 }
  0x2b   :  { %v884_v16 = vld [vmem:[#allocation5 + $0xa0] sm:$0xff]   ;;  %v885_v17 = vld [vmem:[#allocation5 + $0xa8] sm:$0xff]   ;;  %v886_v18 = vld [vmem:[#allocation5 + $0xb0] sm:$0xff]   ;;  %p963_p2 = scmp.ne.s32.totalorder %s658_s8, %s962_s9  ;;  %p968_p4 = scmp.lt.s32.totalorder %s962_s9, %s962_s9 }
  0x2c   :  { %759 = vmatmul.mubr.msk.bf16.vlgmr.msra.gmra.mrb[0].mxu0 %vm52_vm1, %v43_v3  ;;  %v887_v25 = vld [vmem:[#allocation5 + $0xb8] sm:$0xff]   ;;  %v888_v26 = vld [vmem:[#allocation5 + $0xc0] sm:$0xff]   ;;  %v889_v27 = vld [vmem:[#allocation5 + $0xc8] sm:$0xff]  }
  0x2d   :  { %798 = vmatprep.mubr.msk.bf16.mxu0 %vm995_vm0, %v994_v0  ;;  %765 = vmatpush3.bf16.msra.mxu1 %v873_v5  ;;  %v890_v28 = vld [vmem:[#allocation5 + $0xd0] sm:$0xff]   ;;  %v891_v29 = vld [vmem:[#allocation5 + $0xd8] sm:$0xff]   ;;  %v892_v30 = vld [vmem:[#allocation5 + $0xe0] sm:$0xff]   ;;  %p969_p5 = por %p968_p4, %p967_p3 }
  0x2e   :  { %766 = vmatprep.subr.bf16.mxu1 %v994_v0  ;;  %783 = vmatpush3.bf16.msra.mxu0 %v880_v12  ;;  %v893_v31 = vld [vmem:[#allocation5 + $0xe8] sm:$0xff]   ;;  %v894_v32 = vld [vmem:[#allocation5 + $0xf0] sm:$0xff]   ;;  %v895_v39 = vld [vmem:[#allocation5 + $0xf8] sm:$0xff]  }
  0x2f   :  { %784 = vmatprep.subr.bf16.mxu0 %v994_v0  ;;  %v896_v40 = vld [vmem:[#allocation5 + $0x100] sm:$0xff]   ;;  %v897_v41 = vld [vmem:[#allocation5 + $0x108] sm:$0xff]   ;;  %v898_v42 = vld [vmem:[#allocation5 + $0x110] sm:$0xff]   ;;  %p970_p6 = pnand %p969_p5, %p963_p2 }
  0x30   :  { %v899_v43 = vld [vmem:[#allocation5 + $0x118] sm:$0xff]   ;;  %v900_v44 = vld [vmem:[#allocation5 + $0x120] sm:$0xff]   ;;  %v901_v45 = vld [vmem:[#allocation5 + $0x128] sm:$0xff]  }
  0x31   :  { %767 = vmatpush3.bf16.msra.mxu1 %v874_v6  ;;  %v902_v46 = vld [vmem:[#allocation5 + $0x130] sm:$0xff]   ;;  %v903_v53 = vld [vmem:[#allocation5 + $0x138] sm:$0xff]   ;;  %v904_v54 = vld [vmem:[#allocation5 + $0x140] sm:$0xff]  }
  0x32   :  { %768 = vmatprep.subr.bf16.mxu1 %v994_v0  ;;  %785 = vmatpush3.bf16.msra.mxu0 %v881_v13  ;;  %v905_v55 = vld [vmem:[#allocation5 + $0x148] sm:$0xff]   ;;  %v906_v56 = vld [vmem:[#allocation5 + $0x150] sm:$0xff]   ;;  %v907_v57 = vld [vmem:[#allocation5 + $0x158] sm:$0xff]  }
  0x33   :  { %786 = vmatprep.subr.bf16.mxu0 %v994_v0  ;;  %v908_v58 = vld [vmem:[#allocation5 + $0x160] sm:$0xff]   ;;  %v909_v59 = vld [vmem:[#allocation5 + $0x168] sm:$0xff]   ;;  %v910_v60 = vld [vmem:[#allocation5 + $0x170] sm:$0xff]  }
  0x34   :  { %v911_v4 = vld [vmem:[#allocation5 + $0x178] sm:$0xff]  }
  0x35   :  { %769 = vmatpush3.bf16.msra.mxu1 %v875_v7 }
  0x36   :  { %770 = vmatprep.subr.bf16.mxu1 %v994_v0  ;;  %787 = vmatpush3.bf16.msra.mxu0 %v882_v14 }
  0x37   :  { %788 = vmatprep.subr.bf16.mxu0 %v994_v0 }
  0x39   :  { %771 = vmatpush3.bf16.msra.mxu1 %v876_v8 }
  0x3a   :  { %772 = vmatprep.subr.bf16.mxu1 %v994_v0  ;;  %789 = vmatpush3.bf16.msra.mxu0 %v883_v15 }
  0x3b   :  { %790 = vmatprep.subr.bf16.mxu0 %v994_v0 }
  0x3d   :  { %773 = vmatpush3.bf16.msra.mxu1 %v877_v9 }
  0x3e   :  { %774 = vmatprep.subr.bf16.mxu1 %v994_v0  ;;  %791 = vmatpush3.bf16.msra.mxu0 %v884_v16 }
  0x3f   :  { %792 = vmatprep.subr.bf16.mxu0 %v994_v0 }
  0x41   :  { %775 = vmatpush3.bf16.msra.mxu1 %v878_v10 }
  0x42   :  { %776 = vmatprep.subr.bf16.mxu1 %v994_v0  ;;  %793 = vmatpush3.bf16.msra.mxu0 %v885_v17 }
  0x43   :  { %794 = vmatprep.subr.bf16.mxu0 %v994_v0 }
  0x45   :  { %777 = vmatpush3.bf16.msra.mxu1 %v879_v11 }
  0x46   :  { %802 = vmatprep.subr.bf16.mxu1 %v994_v0  ;;  %795 = vmatpush3.bf16.msra.mxu0 %v886_v18 }
  0x47   :  { %796 = vmatprep.subr.bf16.mxu0 %v994_v0 }
  0x4a   :  { %797 = vmatpush3.bf16.msra.mxu0 %v887_v25  ;;  %v39_v25 = vlaneseq }
  0x4b   :  { %822 = vmatprep.subr.bf16.mxu0 %v994_v0 }
  0xff   :  { %v90_v19 = vpop.f32.mrb[0].mxu0 }
 0x100   :  { %v96_v20 = vmax.f32 %v90_v19, 0.0  ;;  %v760_v21 = vpop.f32.mrb[1].mxu0 }
 0x101   :  { %v93_v22 = vpop.f32.mrb[2].mxu0 }
 0x102   :  { %v97_v23 = vpack.c.bf16 %v96_v20, %v96_v20  ;;  %v761_v24 = vpop.f32.mrb[3].mxu0 }
 0x104   :  { %779 = vmatmul.mubr.bf16.vlgmr.msra.gmra.mrb[0].mxu1 %v97_v23 }
 0x105   :  { %818 = vmatprep.mubr.msk.bf16.mxu1 %vm995_vm0, %v994_v0  ;;  %803 = vmatpush3.bf16.msra.mxu1 %v888_v26 }
 0x106   :  { %804 = vmatprep.subr.bf16.mxu1 %v994_v0 }
 0x109   :  { %805 = vmatpush3.bf16.msra.mxu1 %v889_v27  ;;  %v40_v27 = vand.u32 127, %v39_v25 }
 0x10a   :  { %806 = vmatprep.subr.bf16.mxu1 %v994_v0 }
 0x10b   :  { %vm41_vm2 = vcmp.lt.s32.totalorder %v40_v27, 2 }
 0x10d   :  { %807 = vmatpush3.bf16.msra.mxu1 %v890_v28 }
 0x10e   :  { %808 = vmatprep.subr.bf16.mxu1 %v994_v0 }
 0x111   :  { %809 = vmatpush3.bf16.msra.mxu1 %v891_v29 }
 0x112   :  { %810 = vmatprep.subr.bf16.mxu1 %v994_v0 }
 0x115   :  { %811 = vmatpush3.bf16.msra.mxu1 %v892_v30 }
 0x116   :  { %812 = vmatprep.subr.bf16.mxu1 %v994_v0 }
 0x119   :  { %813 = vmatpush3.bf16.msra.mxu1 %v893_v31 }
 0x11a   :  { %814 = vmatprep.subr.bf16.mxu1 %v994_v0 }
 0x11d   :  { %815 = vmatpush3.bf16.msra.mxu1 %v894_v32 }
 0x11e   :  { %816 = vmatprep.subr.bf16.mxu1 %v994_v0 }
 0x121   :  { %817 = vmatpush3.bf16.msra.mxu1 %v895_v39 }
 0x122   :  { %842 = vmatprep.subr.bf16.mxu1 %v994_v0 }
 0x1d7   :  { %v197_v33 = vpop.f32.mrb[0].mxu1 }
 0x1d8   :  { %v203_v34 = vmax.f32 %v197_v33, 0.0  ;;  %v780_v35 = vpop.f32.mrb[1].mxu1 }
 0x1d9   :  { %v200_v36 = vpop.f32.mrb[2].mxu1 }
 0x1da   :  { %v204_v37 = vpack.c.bf16 %v203_v34, %v203_v34  ;;  %v781_v38 = vpop.f32.mrb[3].mxu1 }
 0x1dc   :  { %799 = vmatmul.mubr.bf16.vlgmr.msra.gmra.mrb[4].mxu0 %v204_v37 }
 0x1dd   :  { %838 = vmatprep.mubr.msk.bf16.mxu0 %vm995_vm0, %v994_v0  ;;  %823 = vmatpush3.bf16.msra.mxu0 %v896_v40 }
 0x1de   :  { %824 = vmatprep.subr.bf16.mxu0 %v994_v0 }
 0x1e1   :  { %825 = vmatpush3.bf16.msra.mxu0 %v897_v41 }
 0x1e2   :  { %826 = vmatprep.subr.bf16.mxu0 %v994_v0 }
 0x1e5   :  { %827 = vmatpush3.bf16.msra.mxu0 %v898_v42 }
 0x1e6   :  { %828 = vmatprep.subr.bf16.mxu0 %v994_v0 }
 0x1e9   :  { %829 = vmatpush3.bf16.msra.mxu0 %v899_v43 }
 0x1ea   :  { %830 = vmatprep.subr.bf16.mxu0 %v994_v0 }
 0x1ed   :  { %831 = vmatpush3.bf16.msra.mxu0 %v900_v44 }
 0x1ee   :  { %832 = vmatprep.subr.bf16.mxu0 %v994_v0 }
 0x1f1   :  { %833 = vmatpush3.bf16.msra.mxu0 %v901_v45 }
 0x1f2   :  { %834 = vmatprep.subr.bf16.mxu0 %v994_v0 }
 0x1f5   :  { %835 = vmatpush3.bf16.msra.mxu0 %v902_v46 }
 0x1f6   :  { %836 = vmatprep.subr.bf16.mxu0 %v994_v0 }
 0x1f9   :  { %837 = vmatpush3.bf16.msra.mxu0 %v903_v53 }
 0x2af   :  { %v304_v47 = vpop.f32.mrb[4].mxu0 }
 0x2b0   :  { %v310_v48 = vmax.f32 %v304_v47, 0.0  ;;  %v800_v49 = vpop.f32.mrb[5].mxu0 }
 0x2b1   :  { %v307_v50 = vpop.f32.mrb[6].mxu0 }
 0x2b2   :  { %v311_v51 = vpack.c.bf16 %v310_v48, %v310_v48  ;;  %v801_v52 = vpop.f32.mrb[7].mxu0 }
 0x2b4   :  { %819 = vmatmul.mubr.bf16.vlgmr.msra.gmra.mrb[4].mxu1 %v311_v51 }
 0x2b5   :  { %858 = vmatprep.mubr.msk.bf16.mxu1 %vm995_vm0, %v994_v0  ;;  %843 = vmatpush3.bf16.msra.mxu1 %v904_v54 }
 0x2b6   :  { %844 = vmatprep.subr.bf16.mxu1 %v994_v0 }
 0x2b9   :  { %845 = vmatpush3.bf16.msra.mxu1 %v905_v55 }
 0x2ba   :  { %846 = vmatprep.subr.bf16.mxu1 %v994_v0 }
 0x2bd   :  { %847 = vmatpush3.bf16.msra.mxu1 %v906_v56 }
 0x2be   :  { %848 = vmatprep.subr.bf16.mxu1 %v994_v0 }
 0x2c1   :  { %849 = vmatpush3.bf16.msra.mxu1 %v907_v57 }
 0x2c2   :  { %850 = vmatprep.subr.bf16.mxu1 %v994_v0 }
 0x2c5   :  { %851 = vmatpush3.bf16.msra.mxu1 %v908_v58 }
 0x2c6   :  { %852 = vmatprep.subr.bf16.mxu1 %v994_v0 }
 0x2c9   :  { %853 = vmatpush3.bf16.msra.mxu1 %v909_v59 }
 0x2ca   :  { %854 = vmatprep.subr.bf16.mxu1 %v994_v0 }
 0x2cd   :  { %855 = vmatpush3.bf16.msra.mxu1 %v910_v60 }
 0x2ce   :  { %856 = vmatprep.subr.bf16.mxu1 %v994_v0 }
 0x2d1   :  { %857 = vmatpush3.bf16.msra.mxu1 %v911_v4 }
 0x387   :  { %v411_v61 = vpop.f32.mrb[4].mxu1 }
 0x388   :  { %v417_v62 = vmax.f32 %v411_v61, 0.0  ;;  %v820_v63 = vpop.f32.mrb[5].mxu1 }
 0x389   :  { %v414_v1 = vpop.f32.mrb[6].mxu1 }
 0x38a   :  { %v418_v2 = vpack.c.bf16 %v417_v62, %v417_v62  ;;  %v821_v3 = vpop.f32.mrb[7].mxu1 }
 0x38c   :  { %839 = vmatmul.mubr.bf16.vlgmr.msra.gmra.mrb[8].mxu0 %v418_v2 }
 0x45f   :  { %v518_v5 = vpop.f32.mrb[8].mxu0 }
 0x460   :  { %v524_v6 = vmax.f32 %v518_v5, 0.0  ;;  %v840_v7 = vpop.f32.mrb[9].mxu0 }
 0x461   :  { %v521_v8 = vpop.f32.mrb[10].mxu0 }
 0x462   :  { %v525_v9 = vpack.c.bf16 %v524_v6, %v524_v6  ;;  %v841_v10 = vpop.f32.mrb[11].mxu0 }
 0x464   :  { %859 = vmatmul.mubr.bf16.vlgmr.msra.gmra.mrb[8].mxu1 %v525_v9 }
 0x537   :  { %v625_v11 = vpop.f32.mrb[8].mxu1 }
 0x538   :  { %631 = vrot.lane.b32.xlu0 %v625_v11, %s996_s1  ;;  %v860_v0 = vpop.f32.mrb[9].mxu1 }
 0x539   :  { %v628_v12 = vpop.f32.mrb[10].mxu1 }
 0x53a   :  { %v861_v13 = vpop.f32.mrb[11].mxu1 }
 0x53c   :  { %633 = vrot.lane.b32.xlu0 %v625_v11, %s997_s6 }
 0x5aa   :  { %v632_v14 = vpop.permute.xlu0 %631 }
 0x5ae   :  { %v634_v15 = vpop.permute.xlu0 %633 }
 0x5af   :  { %v635_v16 = vadd.f32 %v634_v15, %v632_v14 }
 0x5b1   :  { %v636_v17 = vmax.f32 %v625_v11, %v635_v16 }
 0x5b3   :  { %v637_v18 = vsub.f32 %v625_v11, %v636_v17  ;;  %v640_v19 = vsub.f32 %v635_v16, %v636_v17 }
 0x5b5   :  { %v638_v20 = vmul.f32 1.442695, %v637_v18  ;;  %v641_v21 = vmul.f32 1.442695, %v640_v19 }
 0x5b7   :  { %912 = vpow2.f32 %v638_v20 }
 0x5b8   :  { %914 = vpow2.f32 %v641_v21 }
 0x5c1   :  { %v913_v22 = vpop.eup %912 }
 0x5c2   :  { %v915_v23 = vpop.eup %914 }
 0x5c3   :  { %v643_v24 = vadd.f32 %v915_v23, %v913_v22 }
 0x5c5   :  { %916 = vlog2.f32 %v643_v24 }
 0x5cf   :  { %v917_v26 = vpop.eup %916 }
 0x5d0   :  { %v645_v28 = vmul.f32 0.6931472, %v917_v26 }
 0x5d2   :  { %v646_v29 = vadd.f32 %v645_v28, %v636_v17 }
 0x5d4   :  { %v647_v30 = vsub.f32 %v625_v11, %v646_v29 }
 0x5d6   :  { %v648_v31 = vsel %vm41_vm2, %v647_v30, 0.0 }
 0x5d7   :  { %650 = vst.msk [vmem:[#allocation7] sm:$0xff] %vm649_vm3, %v648_v31 }
 0x5d8   :  { %973 = shalt.err (!%p970_p6)
}
 0x5d9   :  { %s974_s12 = scalar_lea.hbm %s1112_s2, 128 }
 0x5da   :  { %p975_p7 = scmp.ne.s32.totalorder %s1112_s2, %s974_s12  ;;  %p978_p8 = scmp.lt.u32.totalorder %s974_s12, %s1112_s2 }
 0x5dc   :  { %p980_p9 = pnand %p978_p8, %p975_p7 }
 0x5de   :  { %983 = shalt.err (!%p980_p9)
}
 0x5df   :  { %660 = dma.vmem_to_hbm [thread:$0]  %s658_s8, 128, %s1112_s2, [#allocation4]  }
 0x5e0   :  { %988 = dma.done.wait [#allocation4], 128  }
 0x5e1   :  { %989 = vsyncadd [#allocation4], 4294967168 }
 0x5e2   :  { %664 = vsyncpa [#allocation3], 1 }
 0x5e3   :  { %665 = vsyncpa [#allocation6], 1 }
 0x5e4   :  { %666 = vsyncpa [#allocation4], 1 }

</bundles_post_ra>
